<compile_context>
chip_gen: v6e
topology: v6e:2x2x1
jax: 0.10.0
libtpu: 0.0.40
codegen_flags: <defaults>
</compile_context>

<pallas_src>
import jax
import jax.numpy as jnp
from jax.experimental import pallas as pl
from jax.experimental.pallas import tpu as pltpu


def _actor_kernel(obs_ref, w1_ref, b1_ref, w2_ref, b2_ref, wh_ref, bh_ref,
                  out_ref):
    f32 = jnp.float32
    x = obs_ref[...].astype(f32)                          # (TB, obs_dim)
    obs_dim = x.shape[1]

    # ---- Layer 1: Linear(obs_dim, H) + ReLU --------------------------------
    if obs_dim <= 8:
        # obs_dim is tiny (3 for Pendulum): an MXU pass would contract over
        # mostly padding, so use VPU broadcast multiply-adds instead.
        w1 = w1_ref[...].astype(f32)                      # (obs_dim, H)
        h1 = b1_ref[...].astype(f32)                      # (1, H), broadcasts
        for k in range(obs_dim):                          # static unroll
            h1 = h1 + x[:, k:k + 1] * w1[k:k + 1, :]
    else:
        h1 = jnp.dot(x.astype(w1_ref.dtype), w1_ref[...],
                     preferred_element_type=f32) + b1_ref[...]
    h1 = jnp.maximum(h1, 0.0)

    # ---- Layer 2: Linear(H, H) + ReLU (bf16 MXU, f32 accumulate) -----------
    h2 = jnp.dot(h1.astype(w2_ref.dtype), w2_ref[...],
                 preferred_element_type=f32) + b2_ref[...]
    h2 = jnp.maximum(h2, 0.0)

    # ---- Fused mu / log_std heads: single lane-dense matmul ----------------
    heads = jnp.dot(h2.astype(wh_ref.dtype), wh_ref[...],
                    preferred_element_type=f32) + bh_ref[...]   # (TB, 2*half)
    half = heads.shape[1] // 2
    # lanes [0, half) carry mu; lanes [half, 2*half) carry std = exp(clip(.))
    std = jnp.exp(jnp.clip(heads, -20.0, 2.0))            # EUP exp, f32
    lane = jax.lax.broadcasted_iota(jnp.int32, heads.shape, dimension=1)
    out_ref[...] = jnp.where(lane >= half, std, heads).astype(out_ref.dtype)


def actor_forward(obs, kparams, action_size, *, tb_max=1024, interpret=False):
    """Tiled Pallas Actor forward. Returns (mu, std), each (batch, action_size)."""
    batch, obs_dim = obs.shape
    w1, b1 = kparams["w1"], kparams["b1"]
    w2, b2 = kparams["w2"], kparams["b2"]
    wh, bh = kparams["wh"], kparams["bh"]
    hidden = w2.shape[0]
    head_pad = wh.shape[1]
    half = head_pad // 2

    # Batch tile: full batch if small, else an 8-aligned tile (Pallas masks the
    # partial final block).
    if batch <= tb_max:
        tb = batch
    else:
        tb = max(8, (tb_max // 8) * 8)
    grid = (pl.cdiv(batch, tb),)

    const = lambda i: (0, 0)          # weights resident in VMEM across steps
    in_specs = [
        pl.BlockSpec((tb, obs_dim), lambda i: (i, 0)),
        pl.BlockSpec(w1.shape, const),
        pl.BlockSpec(b1.shape, const),
        pl.BlockSpec(w2.shape, const),
        pl.BlockSpec(b2.shape, const),
        pl.BlockSpec(wh.shape, const),
        pl.BlockSpec(bh.shape, const),
    ]
    out_spec = pl.BlockSpec((tb, head_pad), lambda i: (i, 0))

    flops = 2 * batch * (obs_dim * hidden + hidden * hidden + hidden * head_pad)
    bytes_accessed = (
        obs.size * obs.dtype.itemsize
        + sum(int(a.size) * a.dtype.itemsize for a in (w1, b1, w2, b2, wh, bh))
        + batch * head_pad * 4)
    cost = pl.CostEstimate(flops=flops,
                           transcendentals=batch * head_pad,
                           bytes_accessed=bytes_accessed)

    slab = pl.pallas_call(
        _actor_kernel,
        grid=grid,
        in_specs=in_specs,
        out_specs=out_spec,
        out_shape=jax.ShapeDtypeStruct((batch, head_pad), jnp.float32),
        compiler_params=pltpu.CompilerParams(
            dimension_semantics=("parallel",),       # shard batch over 2 TCs on v7x
            vmem_limit_bytes=32 * 1024 * 1024),      # safe on v5e/v6e/v7x
        cost_estimate=cost,
        interpret=interpret,
    )(obs, w1, b1, w2, b2, wh, bh)

    mu = slab[:, :action_size]
    std = slab[:, half:half + action_size]
    return mu, std


def init_actor_params(key, obs_dim, action_size, hidden=64):
    """f32 params mimicking PyTorch nn.Linear default init (weights stored
    (in_features, out_features), i.e. transpose of nn.Linear.weight)."""
    def linear(k, fan_in, fan_out):
        kw, kb = jax.random.split(k)
        bound = 1.0 / jnp.sqrt(jnp.float32(fan_in))
        w = jax.random.uniform(kw, (fan_in, fan_out), jnp.float32, -bound, bound)
        b = jax.random.uniform(kb, (1, fan_out), jnp.float32, -bound, bound)
        return w, b

    k1, k2, k3, k4 = jax.random.split(key, 4)
    w1, b1 = linear(k1, obs_dim, hidden)
    w2, b2 = linear(k2, hidden, hidden)
    wmu, bmu = linear(k3, hidden, action_size)
    wls, bls = linear(k4, hidden, action_size)
    return {"w1": w1, "b1": b1, "w2": w2, "b2": b2,
            "wmu": wmu, "bmu": bmu, "wls": wls, "bls": bls}


def pack_actor_params(p, *, matmul_dtype=jnp.bfloat16):
    """Pack params for the kernel: fuse mu/log_std heads into one lane-dense,
    zero-padded weight; cast matmul weights to bf16; keep biases f32."""
    hidden = p["w2"].shape[0]
    action_size = p["wmu"].shape[1]
    half = max(64, ((action_size + 63) // 64) * 64)
    head_pad = 2 * half

    wh = jnp.zeros((hidden, head_pad), jnp.float32)
    wh = wh.at[:, :action_size].set(p["wmu"])
    wh = wh.at[:, half:half + action_size].set(p["wls"])
    bh = jnp.zeros((1, head_pad), jnp.float32)
    bh = bh.at[:, :action_size].set(p["bmu"])
    bh = bh.at[:, half:half + action_size].set(p["bls"])

    return {
        "w1": p["w1"].astype(matmul_dtype),
        "b1": p["b1"],                      # f32 elementwise (v5e-safe)
        "w2": p["w2"].astype(matmul_dtype),
        "b2": p["b2"],
        "wh": wh.astype(matmul_dtype),
        "bh": bh,
    }


def actor_forward_ref(obs, p):
    """Pure-JAX f32 reference matching the PyTorch module."""
    h1 = jnp.maximum(obs @ p["w1"] + p["b1"], 0.0)
    h2 = jnp.maximum(h1 @ p["w2"] + p["b2"], 0.0)
    mu = h2 @ p["wmu"] + p["bmu"]
    log_std = jnp.clip(h2 @ p["wls"] + p["bls"], -20.0, 2.0)
    return mu, jnp.exp(log_std)


if __name__ == "__main__":
    # Pendulum-v1: obs_dim = 3, action_size = 1
    OBS_DIM = 3
    ACTION_SIZE = 1

    key = jax.random.PRNGKey(0)
    k_obs, k_params = jax.random.split(key)
    params = init_actor_params(k_params, OBS_DIM, ACTION_SIZE)
    kparams = pack_actor_params(params)

    # Case 1: small single-tile batch (grid = 1)
    BATCH = 8
    obs = jax.random.normal(k_obs, (BATCH, OBS_DIM), jnp.float32)
    mu, std = actor_forward(obs, kparams, ACTION_SIZE)
    mu = jax.block_until_ready(mu)
    std = jax.block_until_ready(std)

    mu_ref, std_ref = actor_forward_ref(obs, params)
    assert mu.shape == (BATCH, ACTION_SIZE) and std.shape == (BATCH, ACTION_SIZE)
    # bf16 matmul inputs + f32 accumulation vs f32 reference -> bf16-level tolerance.
    assert jnp.allclose(mu, mu_ref, atol=2e-2, rtol=2e-2), "mu mismatch (batch=8)"
    assert jnp.allclose(std, std_ref, atol=2e-2, rtol=2e-2), "std mismatch (batch=8)"
    assert bool(jnp.all(std > 0))

    # Case 2: multi-tile batch exercising the pipelined grid with resident weights.
    BATCH2 = 256
    obs2 = jax.random.normal(jax.random.PRNGKey(1), (BATCH2, OBS_DIM), jnp.float32)
    mu2, std2 = actor_forward(obs2, kparams, ACTION_SIZE, tb_max=128)
    mu2 = jax.block_until_ready(mu2)
    std2 = jax.block_until_ready(std2)
    mu2_ref, std2_ref = actor_forward_ref(obs2, params)
    assert jnp.allclose(mu2, mu2_ref, atol=2e-2, rtol=2e-2), "mu mismatch (batch=256)"
    assert jnp.allclose(std2, std2_ref, atol=2e-2, rtol=2e-2), "std mismatch (batch=256)"

    # TODO(synk): sample_action (Normal rsample + tanh squash + log_prob) needs
    # RNG sampling; only the deterministic forward() is implemented as a kernel.
    print("KERNEL_OK")
</pallas_src>

<mosaic_0001>
module attributes {stable_mosaic.version = 11 : i64} {
  func.func @_actor_kernel(%arg0: i32, %arg1: memref<8x3xf32, #tpu.memory_space<vmem>>, %arg2: memref<3x64xbf16, #tpu.memory_space<vmem>>, %arg3: memref<1x64xf32, #tpu.memory_space<vmem>>, %arg4: memref<64x64xbf16, #tpu.memory_space<vmem>>, %arg5: memref<1x64xf32, #tpu.memory_space<vmem>>, %arg6: memref<64x128xbf16, #tpu.memory_space<vmem>>, %arg7: memref<1x128xf32, #tpu.memory_space<vmem>>, %arg8: memref<8x128xf32, #tpu.memory_space<vmem>>) attributes {dimension_semantics = [#tpu.dimension_semantics<parallel>], iteration_bounds = array<i64: 1>, scalar_prefetch = 0 : i64, scratch_operands = 0 : i64, tpu.core_type = #tpu.core_type<tc>, window_params = [{transform_indices = @transform_0, window_bounds = array<i64: 8, 3>}, {pipeline_mode = #tpu.pipeline_mode<synchronous>, transform_indices = @transform_1, window_bounds = array<i64: 3, 64>}, {pipeline_mode = #tpu.pipeline_mode<synchronous>, transform_indices = @transform_2, window_bounds = array<i64: 1, 64>}, {pipeline_mode = #tpu.pipeline_mode<synchronous>, transform_indices = @transform_3, window_bounds = array<i64: 64, 64>}, {pipeline_mode = #tpu.pipeline_mode<synchronous>, transform_indices = @transform_4, window_bounds = array<i64: 1, 64>}, {pipeline_mode = #tpu.pipeline_mode<synchronous>, transform_indices = @transform_5, window_bounds = array<i64: 64, 128>}, {pipeline_mode = #tpu.pipeline_mode<synchronous>, transform_indices = @transform_6, window_bounds = array<i64: 1, 128>}, {transform_indices = @transform_7, window_bounds = array<i64: 8, 128>}]} {
    %c0 = arith.constant 0 : index
    %c0_0 = arith.constant 0 : index
    %0 = vector.load %arg1[%c0, %c0_0] : memref<8x3xf32, #tpu.memory_space<vmem>>, vector<8x3xf32>
    %c0_1 = arith.constant 0 : index
    %c0_2 = arith.constant 0 : index
    %1 = vector.load %arg2[%c0_1, %c0_2] : memref<3x64xbf16, #tpu.memory_space<vmem>>, vector<3x64xbf16>
    %2 = arith.extf %1 : vector<3x64xbf16> to vector<3x64xf32>
    %c0_3 = arith.constant 0 : index
    %c0_4 = arith.constant 0 : index
    %3 = vector.load %arg3[%c0_3, %c0_4] : memref<1x64xf32, #tpu.memory_space<vmem>>, vector<1x64xf32>
    %4 = vector.extract_strided_slice %0 {offsets = [0, 0], sizes = [8, 1], strides = [1, 1]} : vector<8x3xf32> to vector<8x1xf32>
    %5 = vector.extract_strided_slice %2 {offsets = [0, 0], sizes = [1, 64], strides = [1, 1]} : vector<3x64xf32> to vector<1x64xf32>
    %6 = vector.broadcast %4 : vector<8x1xf32> to vector<8x64xf32>
    %7 = vector.broadcast %5 : vector<1x64xf32> to vector<8x64xf32>
    %8 = arith.mulf %6, %7 : vector<8x64xf32>
    %9 = vector.broadcast %3 : vector<1x64xf32> to vector<8x64xf32>
    %10 = arith.addf %9, %8 : vector<8x64xf32>
    %11 = vector.extract_strided_slice %0 {offsets = [0, 1], sizes = [8, 1], strides = [1, 1]} : vector<8x3xf32> to vector<8x1xf32>
    %12 = vector.extract_strided_slice %2 {offsets = [1, 0], sizes = [1, 64], strides = [1, 1]} : vector<3x64xf32> to vector<1x64xf32>
    %13 = vector.broadcast %11 : vector<8x1xf32> to vector<8x64xf32>
    %14 = vector.broadcast %12 : vector<1x64xf32> to vector<8x64xf32>
    %15 = arith.mulf %13, %14 : vector<8x64xf32>
    %16 = arith.addf %10, %15 : vector<8x64xf32>
    %17 = vector.extract_strided_slice %0 {offsets = [0, 2], sizes = [8, 1], strides = [1, 1]} : vector<8x3xf32> to vector<8x1xf32>
    %18 = vector.extract_strided_slice %2 {offsets = [2, 0], sizes = [1, 64], strides = [1, 1]} : vector<3x64xf32> to vector<1x64xf32>
    %19 = vector.broadcast %17 : vector<8x1xf32> to vector<8x64xf32>
    %20 = vector.broadcast %18 : vector<1x64xf32> to vector<8x64xf32>
    %21 = arith.mulf %19, %20 : vector<8x64xf32>
    %22 = arith.addf %16, %21 : vector<8x64xf32>
    %cst = arith.constant 0.000000e+00 : f32
    %23 = vector.broadcast %cst : f32 to vector<8x64xf32>
    %24 = arith.maximumf %22, %23 : vector<8x64xf32>
    %25 = arith.truncf %24 : vector<8x64xf32> to vector<8x64xbf16>
    %c0_5 = arith.constant 0 : index
    %c0_6 = arith.constant 0 : index
    %26 = vector.load %arg4[%c0_5, %c0_6] : memref<64x64xbf16, #tpu.memory_space<vmem>>, vector<64x64xbf16>
    %cst_7 = arith.constant dense<0.000000e+00> : vector<8x64xf32>
    %27 = tpu.matmul %25, %26, %cst_7 {dimension_numbers = #tpu.dot_dimension_numbers<[1], [0], [0], [1], [0, 0, 1, 1], [], []>} : vector<8x64xbf16>, vector<64x64xbf16>, vector<8x64xf32> -> vector<8x64xf32>
    %c0_8 = arith.constant 0 : index
    %c0_9 = arith.constant 0 : index
    %28 = vector.load %arg5[%c0_8, %c0_9] : memref<1x64xf32, #tpu.memory_space<vmem>>, vector<1x64xf32>
    %29 = vector.broadcast %28 : vector<1x64xf32> to vector<8x64xf32>
    %30 = arith.addf %27, %29 : vector<8x64xf32>
    %cst_10 = arith.constant 0.000000e+00 : f32
    %31 = vector.broadcast %cst_10 : f32 to vector<8x64xf32>
    %32 = arith.maximumf %30, %31 : vector<8x64xf32>
    %33 = arith.truncf %32 : vector<8x64xf32> to vector<8x64xbf16>
    %c0_11 = arith.constant 0 : index
    %c0_12 = arith.constant 0 : index
    %34 = vector.load %arg6[%c0_11, %c0_12] : memref<64x128xbf16, #tpu.memory_space<vmem>>, vector<64x128xbf16>
    %cst_13 = arith.constant dense<0.000000e+00> : vector<8x128xf32>
    %35 = tpu.matmul %33, %34, %cst_13 {dimension_numbers = #tpu.dot_dimension_numbers<[1], [0], [0], [1], [0, 0, 1, 1], [], []>} : vector<8x64xbf16>, vector<64x128xbf16>, vector<8x128xf32> -> vector<8x128xf32>
    %c0_14 = arith.constant 0 : index
    %c0_15 = arith.constant 0 : index
    %36 = vector.load %arg7[%c0_14, %c0_15] : memref<1x128xf32, #tpu.memory_space<vmem>>, vector<1x128xf32>
    %37 = vector.broadcast %36 : vector<1x128xf32> to vector<8x128xf32>
    %38 = arith.addf %35, %37 : vector<8x128xf32>
    %cst_16 = arith.constant -2.000000e+01 : f32
    %cst_17 = arith.constant 2.000000e+00 : f32
    %39 = vector.broadcast %cst_16 : f32 to vector<8x128xf32>
    %40 = arith.maximumf %39, %38 : vector<8x128xf32>
    %41 = vector.broadcast %cst_17 : f32 to vector<8x128xf32>
    %42 = arith.minimumf %41, %40 : vector<8x128xf32>
    %43 = math.exp %42 : vector<8x128xf32>
    %44 = tpu.iota {dimensions = array<i32: 1>} : vector<8x128xi32>
    %c64_i32 = arith.constant 64 : i32
    %45 = vector.broadcast %c64_i32 : i32 to vector<8x128xi32>
    %46 = arith.cmpi sge, %44, %45 : vector<8x128xi32>
    %47 = arith.select %46, %43, %38 : vector<8x128xi1>, vector<8x128xf32>
    %c0_18 = arith.constant 0 : index
    %c0_19 = arith.constant 0 : index
    %48 = vector.load %arg8[%c0_18, %c0_19] : memref<8x128xf32, #tpu.memory_space<vmem>>, vector<8x128xf32>
    tpu.vector_store %arg8[%c0_18, %c0_19], %47 {strides = array<i32>} : memref<8x128xf32, #tpu.memory_space<vmem>>, vector<8x128xf32>,
    return
  }
  func.func @transform_0(%arg0: i32) -> (i32, i32) {
    %c0_i32 = arith.constant 0 : i32
    %c0_i32_0 = arith.constant 0 : i32
    return %arg0, %c0_i32 : i32, i32
  }
  func.func @transform_1(%arg0: i32) -> (i32, i32) {
    %c0_i32 = arith.constant 0 : i32
    %c0_i32_0 = arith.constant 0 : i32
    %c0_i32_1 = arith.constant 0 : i32
    return %c0_i32, %c0_i32_0 : i32, i32
  }
  func.func @transform_2(%arg0: i32) -> (i32, i32) {
    %c0_i32 = arith.constant 0 : i32
    %c0_i32_0 = arith.constant 0 : i32
    %c0_i32_1 = arith.constant 0 : i32
    return %c0_i32, %c0_i32_0 : i32, i32
  }
  func.func @transform_3(%arg0: i32) -> (i32, i32) {
    %c0_i32 = arith.constant 0 : i32
    %c0_i32_0 = arith.constant 0 : i32
    %c0_i32_1 = arith.constant 0 : i32
    return %c0_i32, %c0_i32_0 : i32, i32
  }
  func.func @transform_4(%arg0: i32) -> (i32, i32) {
    %c0_i32 = arith.constant 0 : i32
    %c0_i32_0 = arith.constant 0 : i32
    %c0_i32_1 = arith.constant 0 : i32
    return %c0_i32, %c0_i32_0 : i32, i32
  }
  func.func @transform_5(%arg0: i32) -> (i32, i32) {
    %c0_i32 = arith.constant 0 : i32
    %c0_i32_0 = arith.constant 0 : i32
    %c0_i32_1 = arith.constant 0 : i32
    return %c0_i32, %c0_i32_0 : i32, i32
  }
  func.func @transform_6(%arg0: i32) -> (i32, i32) {
    %c0_i32 = arith.constant 0 : i32
    %c0_i32_0 = arith.constant 0 : i32
    %c0_i32_1 = arith.constant 0 : i32
    return %c0_i32, %c0_i32_0 : i32, i32
  }
  func.func @transform_7(%arg0: i32) -> (i32, i32) {
    %c0_i32 = arith.constant 0 : i32
    %c0_i32_0 = arith.constant 0 : i32
    return %arg0, %c0_i32 : i32, i32
  }
}

</mosaic_0001>

<bundles_post_ra>
// kernel: tpu_custom_call.1
= control target key start
LH: loop header
LB: loop body
LE: loop exit
PB: predicated region body
PF: predicated region fallthrough
CT: control target
= control target key end

     0   :  { %12 = vsyncpa [#allocation3], 0  ;;  %s504_s0 = inlined_call_operand.vmem [shape: f32[8,3], index: 0, kind: input, shape index: {}]   ;;  %s505_s1 = inlined_call_operand.vmem [shape: bf16[3,64], index: 1, kind: input, shape index: {}]   ;;  %s506_s2 = inlined_call_operand.vmem [shape: f32[1,64], index: 2, kind: input, shape index: {}]   ;;  %s507_s3 = inlined_call_operand.hbm [shape: bf16[64,64], index: 3, kind: input, shape index: {}]   ;;  %s508_s4 = inlined_call_operand.vmem [shape: f32[1,64], index: 4, kind: input, shape index: {}]   ;;  %s509_s5 = inlined_call_operand.hbm [shape: bf16[64,128], index: 5, kind: input, shape index: {}]   ;;  %s510_s6 = inlined_call_operand.vmem [shape: f32[1,128], index: 6, kind: input, shape index: {}]   ;;  %s511_s7 = inlined_call_operand.hbm [shape: f32[8,128], index: 7, kind: output, shape index: {}]  }
   0x1   :  { %13 = vsyncpa [#allocation6], 0 }
   0x2   :  { %14 = vsyncpa [#allocation4], 0  ;;  %s428_s24 = smov [#allocation2]  }
   0x3   :  { %s26_s25 = sshll.u32 %s428_s24, 4  ;;  %s27_s25 = int_to_ptr.vmem [resolvable:$true] %s26_s25 }
   0x4   :  { %s370_s26 = scalar_lea.vmem %s27_s25, 512  ;;  %p375_p1 = scmp.lt.s32.totalorder %s27_s25, %s27_s25 }
   0x5   :  { %p371_p0 = scmp.ne.s32.totalorder %s27_s25, %s370_s26  ;;  %p376_p2 = scmp.lt.s32.totalorder %s370_s26, %s370_s26 }
   0x7   :  { %p377_p3 = por %p376_p2, %p375_p1 }
   0x9   :  { %p378_p4 = pnand %p377_p3, %p371_p0 }
   0xb   :  { %381 = shalt.err (!%p378_p4)
}
   0xc   :  { %s429_s27 = smov 64   ;;  %s430_s28 = smov 4  }
   0xd   :  { %32 = dma.hbm_to_vmem [thread:$0]  %s507_s3, 512, %s27_s25, [#allocation3], %s429_s27, %s429_s27, %s430_s28  }
   0xe   :  { %s431_s8 = smov [#allocation5]  }
   0xf   :  { %s40_s9 = sshll.u32 %s431_s8, 4  ;;  %s41_s9 = int_to_ptr.vmem [resolvable:$true] %s40_s9 }
  0x10   :  { %s390_s10 = scalar_lea.vmem %s41_s9, 512  ;;  %p395_p6 = scmp.lt.s32.totalorder %s41_s9, %s41_s9 }
  0x11   :  { %p391_p5 = scmp.ne.s32.totalorder %s41_s9, %s390_s10  ;;  %p396_p7 = scmp.lt.s32.totalorder %s390_s10, %s390_s10 }
  0x13   :  { %p397_p8 = por %p396_p7, %p395_p6 }
  0x15   :  { %p398_p9 = pnand %p397_p8, %p391_p5 }
  0x17   :  { %401 = shalt.err (!%p398_p9)
}
  0x18   :  { %46 = dma.hbm_to_vmem [thread:$0]  %s509_s5, 512, %s41_s9, [#allocation6], %s429_s27, %s429_s27, %s430_s28  }
  0x19   :  { %422 = dma.done.wait [#allocation3], 512  }
  0x1a   :  { %423 = vsyncadd [#allocation3], 4294966784 }
  0x1b   :  { %424 = dma.done.wait [#allocation6], 512  }
  0x1c   :  { %425 = vsyncadd [#allocation6], 4294966784  ;;  %v432_v0 = vmov 0   ;;  %v433_v1 = vmov 2   ;;  %v434_v2 = vmov 0.0   ;;  %v56_v3 = vld [vmem:[%s504_s0] sm:$0xff]  ;;  %v65_v11 = vlaneseq }
  0x1d   :  { %348 = vset.pattern.permute.xlu0 %v432_v0  ;;  %350 = vset.pattern.permute.xlu1 %v433_v1  ;;  %v352_v4 = vld [vmem:[#allocation2 + $0x18] sm:$0xff]   ;;  %v353_v5 = vld [vmem:[#allocation2 + $0x10] sm:$0xff]   ;;  %v435_v6 = vmov 1   ;;  %v354_v7 = vld [vmem:[#allocation2 + $0x8] sm:$0xff]   ;;  %vm436_vm0 = vmmov 0   ;;  %vm138_vm1 = vcmask 523264  }
  0x1e   :  { %314 = vmatprep.subr.bf16.mxu0 %v434_v2  ;;  %326 = vmatprep.subr.bf16.mxu1 %v434_v2  ;;  %v355_v8 = vld [vmem:[#allocation2] sm:$0xff]   ;;  %v356_v9 = vld [vmem:[#allocation5 + $0x18] sm:$0xff]   ;;  %v357_v10 = vld [vmem:[#allocation5 + $0x10] sm:$0xff]   ;;  %v66_v12 = vshrl.u32 %v65_v11, 7  ;;  %v271_v52 = vand.u32 127, %v65_v11 }
  0x1f   :  { %62 = vperm.xlu0 %348, %v56_v3   ;;  %88 = vperm.xlu1 %350, %v56_v3   ;;  %v57_v13 = vld [vmem:[%s505_s1] sm:$0x3]  ;;  %v358_v33 = vld [vmem:[#allocation5 + $0x8] sm:$0xff]  }
  0x20   :  { %315 = vmatpush3.bf16.msra.mxu0 %v352_v4  ;;  %322 = vmatprep.mubr.msk.bf16.mxu0 %vm436_vm0, %v434_v2  ;;  %v58_v14 = vunpack.c.l.bf16 %v57_v13  ;;  %v67_v15 = vsub.s32 0, %v66_v12  ;;  %v83_v17 = vsub.s32 1, %v66_v12  ;;  %v93_v18 = vsub.s32 2, %v66_v12  ;;  %v291_v23 = vld [vmem:[%s506_s2] ss:$0 sm:$0xff] }
  0x21   :  { %316 = vmatprep.subr.bf16.mxu0 %v434_v2  ;;  %334 = vmatprep.mubr.msk.bf16.mxu1 %vm436_vm0, %v434_v2  ;;  %v359_v34 = vld [vmem:[#allocation5] sm:$0xff]   ;;  %vm272_vm2 = vcmp.ge.s32.totalorder %v271_v52, 64 }
  0x22   :  { %327 = vmatpush3.bf16.msra.mxu1 %v356_v9  ;;  %v68_v16 = vrot.slane %v58_v14, %v67_v15  ;;  %v84_v21 = vrot.slane %v58_v14, %v83_v17  ;;  %v94_v22 = vrot.slane %v58_v14, %v93_v18  ;;  %v292_v35 = vld [vmem:[%s508_s4] ss:$0 sm:$0xff]  ;;  %s437_s4 = smov [#allocation7]  }
  0x23   :  { %349 = vset.pattern.permute.xlu0 %v435_v6  ;;  %328 = vmatprep.subr.bf16.mxu1 %v434_v2  ;;  %v298_v43 = vld [vmem:[%s510_s6] ss:$0 sm:$0xff]  ;;  %s281_s18 = sshll.u32 %s437_s4, 4  ;;  %s282_s18 = int_to_ptr.vmem [resolvable:$true] %s281_s18 }
  0x24   :  { %78 = vperm.xlu0 %349, %v56_v3   ;;  %317 = vmatpush3.bf16.msra.mxu0 %v353_v5  ;;  %s402_s19 = scalar_lea.vmem %s282_s18, 128  ;;  %p407_p11 = scmp.lt.s32.totalorder %s282_s18, %s282_s18 }
  0x25   :  { %318 = vmatprep.subr.bf16.mxu0 %v434_v2  ;;  %p403_p10 = scmp.ne.s32.totalorder %s282_s18, %s402_s19  ;;  %p408_p12 = scmp.lt.s32.totalorder %s402_s19, %s402_s19 }
  0x26   :  { %329 = vmatpush3.bf16.msra.mxu1 %v357_v10 }
  0x27   :  { %330 = vmatprep.subr.bf16.mxu1 %v434_v2  ;;  %p409_p13 = por %p408_p12, %p407_p11 }
  0x28   :  { %351 = vset.pattern.permute.xlu0 %v433_v1  ;;  %319 = vmatpush3.bf16.msra.mxu0 %v354_v7 }
  0x29   :  { %320 = vmatprep.subr.bf16.mxu0 %v434_v2  ;;  %p410_p0 = pnand %p409_p13, %p403_p10 }
  0x2a   :  { %331 = vmatpush3.bf16.msra.mxu1 %v358_v33 }
  0x2b   :  { %332 = vmatprep.subr.bf16.mxu1 %v434_v2 }
  0x2c   :  { %321 = vmatpush3.bf16.msra.mxu0 %v355_v8 }
  0x2e   :  { %333 = vmatpush3.bf16.msra.mxu1 %v359_v34 }
  0x9a   :  { %v63_v19 = vpop.permute.xlu0 %62  ;;  %v89_v24 = vpop.permute.xlu1 %88 }
  0x9b   :  { %v69_v20 = vmul.f32 %v68_v16, %v63_v19  ;;  %v95_v28 = vmul.f32 %v94_v22, %v89_v24 }
  0x9d   :  { %v76_v26 = vadd.f32 %v291_v23, %v69_v20 }
  0x9f   :  { %v79_v25 = vpop.permute.xlu0 %78 }
  0xa0   :  { %v85_v27 = vmul.f32 %v84_v21, %v79_v25 }
  0xa2   :  { %v86_v29 = vadd.f32 %v85_v27, %v76_v26 }
  0xa4   :  { %v96_v30 = vadd.f32 %v95_v28, %v86_v29 }
  0xa6   :  { %v97_v31 = vmax.f32 %v96_v30, 0.0 }
  0xa8   :  { %v98_v32 = vpack.c.bf16 %v97_v31, %v97_v31 }
  0xaa   :  { %323 = vmatmul.mubr.msk.bf16.vlgmr.msra.gmra.mxu0 %vm138_vm1, %v98_v32 }
 0x16a   :  { %v176_v36 = vpop.f32.mrf.mxu0 }
 0x16b   :  { %v177_v37 = vadd.f32 %v292_v35, %v176_v36 }
 0x16c   :  { %v324_v38 = vpop.f32.mrf.mxu0 }
 0x16d   :  { %v182_v39 = vmax.f32 %v177_v37, 0.0 }
 0x16e   :  { %v179_v40 = vpop.f32.mrf.mxu0 }
 0x16f   :  { %v183_v41 = vpack.c.bf16 %v182_v39, %v182_v39 }
 0x170   :  { %v325_v42 = vpop.f32.mrf.mxu0 }
 0x171   :  { %335 = vmatmul.mubr.msk.bf16.vlgmr.msra.gmra.mxu1 %vm138_vm1, %v183_v41 }
 0x231   :  { %v260_v44 = vpop.f32.mrf.mxu1 }
 0x232   :  { %v261_v45 = vadd.f32 %v298_v43, %v260_v44 }
 0x233   :  { %v336_v46 = vpop.f32.mrf.mxu1 }
 0x234   :  { %v266_v47 = vmax.f32 %v261_v45, -20.0 }
 0x235   :  { %v263_v48 = vpop.f32.mrf.mxu1 }
 0x236   :  { %v267_v49 = vmin.f32 %v266_v47, 2.0 }
 0x237   :  { %v337_v50 = vpop.f32.mrf.mxu1 }
 0x238   :  { %v268_v51 = vmul.f32 1.442695, %v267_v49 }
 0x23a   :  { %360 = vpow2.f32 %v268_v51 }
 0x247   :  { %v361_v53 = vpop.eup %360 }
 0x248   :  { %v273_v54 = vsel %vm272_vm2, %v361_v53, %v261_v45 }
 0x249   :  { %274 = vst [vmem:[#allocation7] sm:$0xff] %v273_v54 }
 0x24a   :  { %413 = shalt.err (!%p410_p0)
}
 0x24b   :  { %284 = dma.vmem_to_hbm [thread:$0]  %s282_s18, 128, %s511_s7, [#allocation4]  }
 0x24c   :  { %426 = dma.done.wait [#allocation4], 128  }
 0x24d   :  { %427 = vsyncadd [#allocation4], 4294967168 }
 0x24e   :  { %288 = vsyncpa [#allocation3], 1 }
 0x24f   :  { %289 = vsyncpa [#allocation6], 1 }
 0x250   :  { %290 = vsyncpa [#allocation4], 1 }

</bundles_post_ra>
